<compile_context>
chip_gen: v5e
topology: v5e:2x2
jax: 0.10.0
libtpu: 0.0.40
codegen_flags: <defaults>
</compile_context>

<pallas_src>
import jax
import jax.numpy as jnp
from jax.experimental import pallas as pl
from jax.experimental.pallas import tpu as pltpu

_LANE = 128
_SUBLANE = 8
_EPS = 1e-5


def _round_up(x, m):
    return (x + m - 1) // m * m


# ----------------------------------------------------------------------------
# Kernels
# ----------------------------------------------------------------------------
def _linear_kernel(x_ref, w_ref, b_ref, o_ref):
    """y = x @ W + b for one batch tile (W / b resident across the grid)."""
    y = jnp.dot(x_ref[...], w_ref[...], preferred_element_type=jnp.float32)
    o_ref[...] = (y + b_ref[...]).astype(o_ref.dtype)


def _linear_bn_kernel(x_ref, w_ref, gamma_ref, beta_ref, o_ref):
    """Fused linear + BatchNorm1d (training stats) for one feature tile.

    The linear bias is intentionally omitted: it is exactly cancelled by the
    per-feature mean subtraction of batch norm.
    """
    y = jnp.dot(x_ref[...], w_ref[...], preferred_element_type=jnp.float32)
    # Per-feature statistics over the batch (sublane) axis — exact because this
    # feature tile sees the whole batch.
    mean = jnp.mean(y, axis=0, keepdims=True)
    yc = y - mean
    var = jnp.mean(yc * yc, axis=0, keepdims=True)
    scale = jax.lax.rsqrt(var + _EPS) * gamma_ref[...]
    o_ref[...] = (yc * scale + beta_ref[...]).astype(o_ref.dtype)


# ----------------------------------------------------------------------------
# Wrapper
# ----------------------------------------------------------------------------
def numerical_embedding(x, weight, bias, gamma, beta, *, normalize=True):
    """
    Args:
      x:      (batch, input_dim) float32
      weight: (input_dim, output_dim) float32  (torch weight.T)
      bias:   (output_dim,) float32
      gamma:  (output_dim,) float32  (BatchNorm weight)
      beta:   (output_dim,) float32  (BatchNorm bias)
    Returns:
      (batch, output_dim) float32
    """
    batch, input_dim = x.shape
    output_dim = weight.shape[1]

    # Lane-dense feature axis: pad to a multiple of 128 (unmasked vector stores).
    n_pad = _round_up(output_dim, _LANE)
    w_p = jnp.pad(weight, ((0, 0), (0, n_pad - output_dim)))

    apply_bn = normalize and batch > 1  # mirrors torch's shape[0] > 1 check

    if apply_bn:
        g_p = jnp.pad(gamma, (0, n_pad - output_dim)).reshape(1, n_pad)
        be_p = jnp.pad(beta, (0, n_pad - output_dim)).reshape(1, n_pad)

        # Largest N tile (multiple of 128) dividing n_pad; shrink it if the
        # full-batch y tile would get large (keeps v7x's 64 MiB VMEM happy).
        tn = n_pad
        for cand in (512, 256, 128):
            if n_pad % cand == 0:
                tn = min(n_pad, cand)
                break
        while tn > _LANE and 2 * batch * tn * 4 > (8 << 20):
            tn //= 2

        grid = (n_pad // tn,)
        est = 4 * (batch * input_dim            # x, resident across the grid
                   + 2 * input_dim * tn         # W tiles (double-buffered)
                   + 2 * 2 * tn                 # gamma/beta tiles
                   + 2 * batch * tn)            # output tiles
        vmem_limit = int(min(max(2 * est + (4 << 20), 16 << 20), 100 << 20))

        out_p = pl.pallas_call(
            _linear_bn_kernel,
            out_shape=jax.ShapeDtypeStruct((batch, n_pad), jnp.float32),
            grid=grid,
            in_specs=[
                pl.BlockSpec((batch, input_dim), lambda j: (0, 0)),
                pl.BlockSpec((input_dim, tn), lambda j: (0, j)),
                pl.BlockSpec((1, tn), lambda j: (0, j)),
                pl.BlockSpec((1, tn), lambda j: (0, j)),
            ],
            out_specs=pl.BlockSpec((batch, tn), lambda j: (0, j)),
            compiler_params=pltpu.CompilerParams(
                dimension_semantics=("parallel",),
                vmem_limit_bytes=vmem_limit,
            ),
        )(x, w_p, g_p, be_p)
        return out_p[:, :output_dim]

    # ---- plain linear path (normalize=False or batch == 1) -----------------
    b_p = jnp.pad(bias, (0, n_pad - output_dim)).reshape(1, n_pad)

    # Batch-tiled grid; rows padded so every tile is (8,128)-aligned.
    tm = min(512, _round_up(batch, _SUBLANE))
    m_pad = _round_up(batch, tm)
    x_p = jnp.pad(x, ((0, m_pad - batch), (0, 0)))

    grid = (m_pad // tm,)
    est = 4 * (2 * tm * input_dim               # x tiles (double-buffered)
               + input_dim * n_pad + n_pad      # W + bias, resident
               + 2 * tm * n_pad)                # output tiles
    vmem_limit = int(min(max(2 * est + (4 << 20), 16 << 20), 100 << 20))

    out_p = pl.pallas_call(
        _linear_kernel,
        out_shape=jax.ShapeDtypeStruct((m_pad, n_pad), jnp.float32),
        grid=grid,
        in_specs=[
            pl.BlockSpec((tm, input_dim), lambda i: (i, 0)),
            pl.BlockSpec((input_dim, n_pad), lambda i: (0, 0)),
            pl.BlockSpec((1, n_pad), lambda i: (0, 0)),
        ],
        out_specs=pl.BlockSpec((tm, n_pad), lambda i: (i, 0)),
        compiler_params=pltpu.CompilerParams(
            dimension_semantics=("parallel",),
            vmem_limit_bytes=vmem_limit,
        ),
    )(x_p, w_p, b_p)
    return out_p[:batch, :output_dim]


# ----------------------------------------------------------------------------
# Params / reference
# ----------------------------------------------------------------------------
def init_params(key, input_dim, output_dim):
    """Deterministic parameter init matching the torch module's _init_weights."""
    bound = (6.0 / (input_dim + output_dim)) ** 0.5     # Xavier/Glorot uniform
    w = jax.random.uniform(
        key, (input_dim, output_dim), jnp.float32, minval=-bound, maxval=bound
    )
    b = jnp.zeros((output_dim,), jnp.float32)           # nn.init.zeros_
    gamma = jnp.ones((output_dim,), jnp.float32)        # BatchNorm1d default weight
    beta = jnp.zeros((output_dim,), jnp.float32)        # BatchNorm1d default bias
    return w, b, gamma, beta


def _reference(x, w, b, gamma, beta, normalize=True):
    y = x @ w + b
    if normalize and x.shape[0] > 1:
        mean = y.mean(axis=0, keepdims=True)
        var = ((y - mean) ** 2).mean(axis=0, keepdims=True)
        y = (y - mean) / jnp.sqrt(var + _EPS) * gamma + beta
    return y


if __name__ == "__main__":
    key = jax.random.PRNGKey(0)
    k_x, k_w = jax.random.split(key)

    batch, input_dim, output_dim = 8, 16, 32
    x = jax.random.normal(k_x, (batch, input_dim), jnp.float32)
    w, b, gamma, beta = init_params(k_w, input_dim, output_dim)

    # BN path (normalize=True, batch > 1)
    out = jax.block_until_ready(
        numerical_embedding(x, w, b, gamma, beta, normalize=True)
    )
    ref = _reference(x, w, b, gamma, beta, normalize=True)
    assert out.shape == (batch, output_dim)
    assert jnp.allclose(out, ref, atol=1e-4, rtol=1e-4)

    # Plain-linear path: batch of 1 skips BN in the torch module.
    x1 = x[:1]
    out1 = jax.block_until_ready(
        numerical_embedding(x1, w, b, gamma, beta, normalize=True)
    )
    ref1 = _reference(x1, w, b, gamma, beta, normalize=True)
    assert jnp.allclose(out1, ref1, atol=1e-4, rtol=1e-4)

    # normalize=False path
    out2 = jax.block_until_ready(
        numerical_embedding(x, w, b, gamma, beta, normalize=False)
    )
    ref2 = _reference(x, w, b, gamma, beta, normalize=False)
    assert jnp.allclose(out2, ref2, atol=1e-4, rtol=1e-4)

    print("KERNEL_OK")
</pallas_src>

<mosaic_0001>
module attributes {stable_mosaic.version = 11 : i64} {
  func.func @_linear_bn_kernel(%arg0: i32, %arg1: memref<8x16xf32, #tpu.memory_space<vmem>>, %arg2: memref<16x128xf32, #tpu.memory_space<vmem>>, %arg3: memref<1x128xf32, #tpu.memory_space<vmem>>, %arg4: memref<1x128xf32, #tpu.memory_space<vmem>>, %arg5: memref<8x128xf32, #tpu.memory_space<vmem>>) attributes {dimension_semantics = [#tpu.dimension_semantics<parallel>], iteration_bounds = array<i64: 1>, scalar_prefetch = 0 : i64, scratch_operands = 0 : i64, tpu.core_type = #tpu.core_type<tc>, window_params = [{pipeline_mode = #tpu.pipeline_mode<synchronous>, transform_indices = @transform_0, window_bounds = array<i64: 8, 16>}, {transform_indices = @transform_1, window_bounds = array<i64: 16, 128>}, {transform_indices = @transform_2, window_bounds = array<i64: 1, 128>}, {transform_indices = @transform_3, window_bounds = array<i64: 1, 128>}, {transform_indices = @transform_4, window_bounds = array<i64: 8, 128>}]} {
    %c0 = arith.constant 0 : index
    %c0_0 = arith.constant 0 : index
    %0 = vector.load %arg1[%c0, %c0_0] : memref<8x16xf32, #tpu.memory_space<vmem>>, vector<8x16xf32>
    %c0_1 = arith.constant 0 : index
    %c0_2 = arith.constant 0 : index
    %1 = vector.load %arg2[%c0_1, %c0_2] : memref<16x128xf32, #tpu.memory_space<vmem>>, vector<16x128xf32>
    %cst = arith.constant dense<0.000000e+00> : vector<8x128xf32>
    %2 = tpu.matmul %0, %1, %cst {dimension_numbers = #tpu.dot_dimension_numbers<[1], [0], [0], [1], [0, 0, 1, 1], [], []>} : vector<8x16xf32>, vector<16x128xf32>, vector<8x128xf32> -> vector<8x128xf32>
    %cst_3 = arith.constant dense<0.000000e+00> : vector<128xf32>
    %3 = vector.multi_reduction <add>, %2, %cst_3 [0] : vector<8x128xf32> to vector<128xf32>
    %4 = vector.shape_cast %3 : vector<128xf32> to vector<1x128xf32>
    %cst_4 = arith.constant 8.000000e+00 : f32
    %5 = vector.broadcast %cst_4 : f32 to vector<1x128xf32>
    %6 = arith.divf %4, %5 : vector<1x128xf32>
    %7 = vector.broadcast %6 : vector<1x128xf32> to vector<8x128xf32>
    %8 = arith.subf %2, %7 : vector<8x128xf32>
    %9 = arith.mulf %8, %8 : vector<8x128xf32>
    %cst_5 = arith.constant dense<0.000000e+00> : vector<128xf32>
    %10 = vector.multi_reduction <add>, %9, %cst_5 [0] : vector<8x128xf32> to vector<128xf32>
    %11 = vector.shape_cast %10 : vector<128xf32> to vector<1x128xf32>
    %cst_6 = arith.constant 8.000000e+00 : f32
    %12 = vector.broadcast %cst_6 : f32 to vector<1x128xf32>
    %13 = arith.divf %11, %12 : vector<1x128xf32>
    %cst_7 = arith.constant 9.99999974E-6 : f32
    %14 = vector.broadcast %cst_7 : f32 to vector<1x128xf32>
    %15 = arith.addf %13, %14 : vector<1x128xf32>
    %16 = math.rsqrt %15 : vector<1x128xf32>
    %c0_8 = arith.constant 0 : index
    %c0_9 = arith.constant 0 : index
    %17 = vector.load %arg3[%c0_8, %c0_9] : memref<1x128xf32, #tpu.memory_space<vmem>>, vector<1x128xf32>
    %18 = arith.mulf %16, %17 : vector<1x128xf32>
    %19 = vector.broadcast %18 : vector<1x128xf32> to vector<8x128xf32>
    %20 = arith.mulf %8, %19 : vector<8x128xf32>
    %c0_10 = arith.constant 0 : index
    %c0_11 = arith.constant 0 : index
    %21 = vector.load %arg4[%c0_10, %c0_11] : memref<1x128xf32, #tpu.memory_space<vmem>>, vector<1x128xf32>
    %22 = vector.broadcast %21 : vector<1x128xf32> to vector<8x128xf32>
    %23 = arith.addf %20, %22 : vector<8x128xf32>
    %c0_12 = arith.constant 0 : index
    %c0_13 = arith.constant 0 : index
    %24 = vector.load %arg5[%c0_12, %c0_13] : memref<8x128xf32, #tpu.memory_space<vmem>>, vector<8x128xf32>
    tpu.vector_store %arg5[%c0_12, %c0_13], %23 {strides = array<i32>} : memref<8x128xf32, #tpu.memory_space<vmem>>, vector<8x128xf32>,
    return
  }
  func.func @transform_0(%arg0: i32) -> (i32, i32) {
    %c0_i32 = arith.constant 0 : i32
    %c0_i32_0 = arith.constant 0 : i32
    %c0_i32_1 = arith.constant 0 : i32
    return %c0_i32, %c0_i32_0 : i32, i32
  }
  func.func @transform_1(%arg0: i32) -> (i32, i32) {
    %c0_i32 = arith.constant 0 : i32
    %c0_i32_0 = arith.constant 0 : i32
    return %c0_i32, %arg0 : i32, i32
  }
  func.func @transform_2(%arg0: i32) -> (i32, i32) {
    %c0_i32 = arith.constant 0 : i32
    %c0_i32_0 = arith.constant 0 : i32
    return %c0_i32, %arg0 : i32, i32
  }
  func.func @transform_3(%arg0: i32) -> (i32, i32) {
    %c0_i32 = arith.constant 0 : i32
    %c0_i32_0 = arith.constant 0 : i32
    return %c0_i32, %arg0 : i32, i32
  }
  func.func @transform_4(%arg0: i32) -> (i32, i32) {
    %c0_i32 = arith.constant 0 : i32
    %c0_i32_0 = arith.constant 0 : i32
    return %c0_i32, %arg0 : i32, i32
  }
}

</mosaic_0001>

<bundles_post_ra>
// kernel: tpu_custom_call.1
= control target key start
LH: loop header
LB: loop body
LE: loop exit
PB: predicated region body
PF: predicated region fallthrough
CT: control target
= control target key end

     0   :  { %9 = vsyncpa [#allocation3], 0  ;;  %s273_s0 = inlined_call_operand.hbm [shape: f32[8,16], index: 0, kind: input, shape index: {}]   ;;  %s274_s1 = inlined_call_operand.hbm [shape: f32[16,128], index: 1, kind: input, shape index: {}]   ;;  %s275_s2 = inlined_call_operand.vmem [shape: f32[1,128], index: 2, kind: input, shape index: {}]   ;;  %s276_s3 = inlined_call_operand.vmem [shape: f32[1,128], index: 3, kind: input, shape index: {}]   ;;  %s277_s4 = inlined_call_operand.hbm [shape: f32[8,128], index: 4, kind: output, shape index: {}]  }
   0x1   :  { %10 = vsyncpa [#allocation6], 0 }
   0x2   :  { %11 = vsyncpa [#allocation4], 0  ;;  %s17_s17 = sshll.u32 %s273_s0, 4  ;;  %s227_s18 = smov [#allocation2]   ;;  %s18_s17 = int_to_ptr.hbm [resolvable:$true] %s17_s17 }
   0x3   :  { %s19_s19 = sshll.u32 %s227_s18, 4  ;;  %s27_s22 = sshll.u32 %s274_s1, 4  ;;  %s20_s19 = int_to_ptr.vmem [resolvable:$true] %s19_s19  ;;  %s28_s22 = int_to_ptr.hbm [resolvable:$true] %s27_s22 }
   0x4   :  { %22 = dma.hbm_to_vmem [thread:$0]  %s18_s17, 128, %s20_s19, [#allocation3]  }
   0x5   :  { %s228_s23 = smov [#allocation5]   ;;  %s229_s25 = smov 128  }
   0x6   :  { %s29_s24 = sshll.u32 %s228_s23, 4  ;;  %s230_s26 = smov 8   ;;  %s30_s24 = int_to_ptr.vmem [resolvable:$true] %s29_s24 }
   0x7   :  { %35 = dma.hbm_to_vmem [thread:$0]  %s28_s22, 256, %s30_s24, [#allocation6], %s229_s25, %s229_s25, %s230_s26  }
   0x8   :  { %221 = dma.done.wait [#allocation3], 128  }
   0x9   :  { %222 = vsyncadd [#allocation3], 4294967168 }
   0xa   :  { %223 = dma.done.wait [#allocation6], 256  }
   0xb   :  { %224 = vsyncadd [#allocation6], 4294967040  ;;  %v50_v0 = vld [vmem:[#allocation5 + $0x8] sm:$0xff]  ;;  %v49_v1 = vld [vmem:[#allocation5] sm:$0xff]  ;;  %vm51_vm0 = vcmask 130048   ;;  %v231_v3 = vmov 8.0  }
   0xc   :  { %69 = vmatpush.msra.mxu0 %v50_v0  ;;  %v48_v2 = vld [vmem:[#allocation2] sm:$0xff]  ;;  %145 = vrcp.f32 %v231_v3  ;;  %s232_s29 = smov [#allocation7]   ;;  %s126_s7 = sshll.u32 %s277_s4, 4  ;;  %s127_s7 = int_to_ptr.hbm [resolvable:$true] %s126_s7 }
   0xd   :  { %v109_v34 = vld [vmem:[%s275_s2] sm:$0x1]  ;;  %s124_s30 = sshll.u32 %s232_s29, 4  ;;  %s125_s30 = int_to_ptr.vmem [resolvable:$true] %s124_s30 }
   0xe   :  { %70 = vmatpush.msra.mxu0 %v49_v1  ;;  %v144_v38 = vld [vmem:[%s276_s3] ss:$0 sm:$0xff] }
   0xf   :  { %137 = vmatmul.msk.f32.vlgmr.msra.gmra.mxu0 %vm51_vm0, %v48_v2 }
  0x12   :  { %v146_v4 = vpop.eup %145 }
  0x13   :  { %v82_v5 = vmul.f32 8.0, %v146_v4  ;;  %vm86_vm1 = vweird.f32 %v146_v4 }
  0x15   :  { %v83_v6 = vsub.f32 1.0, %v82_v5 }
  0x17   :  { %v84_v9 = vmul.f32 %v146_v4, %v83_v6 }
  0x19   :  { %v85_v12 = vadd.f32 %v146_v4, %v84_v9 }
  0x1b   :  { %v87_v15 = vsel %vm86_vm1, %v146_v4, %v85_v12 }
  0x8c   :  { %v72_v7 = vpop.f32.mrf.mxu0 }
  0x8d   :  { %v75_v8 = vrot.slane %v72_v7, 4 }
  0x8f   :  { %v76_v10 = vadd.f32 %v75_v8, %v72_v7 }
  0x91   :  { %v77_v11 = vrot.slane %v76_v10, 2 }
  0x93   :  { %v78_v13 = vadd.f32 %v77_v11, %v76_v10 }
  0x95   :  { %v79_v14 = vrot.slane %v78_v13, 1 }
  0x97   :  { %v80_v16 = vadd.f32 %v79_v14, %v78_v13 }
  0x99   :  { %v88_v17 = vmul.f32 %v87_v15, %v80_v16 }
  0x9b   :  { %v89_v18 = vsub.f32 %v72_v7, %v88_v17 }
  0x9d   :  { %v90_v19 = vmul.f32 %v89_v18, %v89_v18 }
  0x9f   :  { %v91_v20 = vrot.slane %v90_v19, 4 }
  0xa1   :  { %v92_v21 = vadd.f32 %v91_v20, %v90_v19 }
  0xa3   :  { %v93_v22 = vrot.slane %v92_v21, 2 }
  0xa5   :  { %v94_v23 = vadd.f32 %v93_v22, %v92_v21 }
  0xa7   :  { %v95_v24 = vrot.slane %v94_v23, 1 }
  0xa9   :  { %v96_v25 = vadd.f32 %v95_v24, %v94_v23 }
  0xab   :  { %v97_v26 = vmul.f32 %v96_v25, %v87_v15 }
  0xad   :  { %v98_v27 = vadd.f32 1e-05, %v97_v26 }
  0xaf   :  { %147 = vrsqrt.f32 %v98_v27  ;;  %vm105_vm3 = vweird.f32 %v98_v27 }
  0xb5   :  { %v148_v28 = vpop.eup %147 }
  0xb6   :  { %v100_v29 = vmul.f32 %v148_v28, %v98_v27  ;;  %vm106_vm2 = vweird.f32 %v148_v28 }
  0xb7   :  { %vm107_vm4 = vmor %vm105_vm3, %vm106_vm2 }
  0xb8   :  { %v101_v30 = vmul.f32 %v148_v28, %v100_v29 }
  0xba   :  { %v102_v31 = vmul.f32 0.5, %v101_v30 }
  0xbc   :  { %v103_v32 = vsub.f32 1.5, %v102_v31 }
  0xbe   :  { %v104_v33 = vmul.f32 %v148_v28, %v103_v32 }
  0xc0   :  { %v108_v35 = vsel %vm107_vm4, %v148_v28, %v104_v33 }
  0xc1   :  { %v110_v36 = vmul.f32 %v109_v34, %v108_v35 }
  0xc3   :  { %v111_v37 = vperm.slane %v110_v36, 0 }
  0xc5   :  { %v112_v39 = vmul.f32 %v111_v37, %v89_v18 }
  0xc7   :  { %v117_v40 = vadd.f32 %v144_v38, %v112_v39 }
  0xc9   :  { %118 = vst [vmem:[#allocation7] sm:$0xff] %v117_v40 }
  0xca   :  { %129 = dma.vmem_to_hbm [thread:$0]  %s125_s30, 128, %s127_s7, [#allocation4]  }
  0xcb   :  { %225 = dma.done.wait [#allocation4], 128  }
  0xcc   :  { %226 = vsyncadd [#allocation4], 4294967168 }
  0xcd   :  { %134 = vsyncpa [#allocation3], 1 }
  0xce   :  { %135 = vsyncpa [#allocation6], 1 }
  0xcf   :  { %136 = vsyncpa [#allocation4], 1 }

</bundles_post_ra>
